<compile_context>
chip_gen: v5e
topology: v5e:2x2
jax: 0.10.0
libtpu: 0.0.40
codegen_flags: <defaults>
</compile_context>

<pallas_src>
import jax
import jax.numpy as jnp
from jax.experimental import pallas as pl
from jax.experimental.pallas import tpu as pltpu

LANE = 128


def _dwconv_kernel(x_ref, w_ref, b_ref, o_ref, xpad_ref):
    # x_ref   : (1, H, W, Ct)   unpadded input tile (input dtype)
    # w_ref   : (3, 3, Ct)      depthwise taps for this channel tile
    # b_ref   : (1, Ct)         bias
    # o_ref   : (1, H, W, Ct)   output tile
    # xpad_ref: (H+2, W+2, Ct)  f32 VMEM halo scratch
    H = o_ref.shape[1]
    W = o_ref.shape[2]
    Ct = o_ref.shape[3]

    # Zero only the 1-pixel border of the halo scratch (the interior is fully
    # overwritten below).  Re-done every step: each TensorCore has its own
    # scratch instance under megacore sharding, so a program_id==0 guard
    # would be unsafe.  Cost is ~(2H+2W+4)*Ct elements vs H*W*Ct before.
    zrow = jnp.zeros((W + 2, Ct), jnp.float32)
    xpad_ref[0] = zrow
    xpad_ref[H + 1] = zrow
    zcol = jnp.zeros((H + 2, 1, Ct), jnp.float32)
    xpad_ref[:, 0:1, :] = zcol
    xpad_ref[:, W + 1:W + 2, :] = zcol

    # Interior fill with the current tile (f32 for accumulation).
    xpad_ref[1:H + 1, 1:W + 1, :] = x_ref[0].astype(jnp.float32)

    # Tap weights: load + cast once, outside the unrolled loop (JAX does not
    # CSE the per-tap reloads/broadcasts).
    wf = w_ref[...].astype(jnp.float32)           # (3, 3, Ct)

    # 3x3 depthwise conv = 9 shifted FMAs (pure VPU work, no MXU).
    # Hoist the kw (sublane) shift: one shifted load per kw, then the three kh
    # taps are leading-dim value slices of that load (vreg-granular).
    # Accumulate in a VALUE (no scratch round-trips); write o_ref once.
    acc = None
    for kw in range(3):
        xs = xpad_ref[:, kw:kw + W, :]            # (H+2, W, Ct) f32
        for kh in range(3):
            part = xs[kh:kh + H] * wf[kh, kw]
            acc = part if acc is None else acc + part
    acc = acc + b_ref[0, :].astype(jnp.float32)
    o_ref[0] = acc.astype(o_ref.dtype)


def _vmem_capacity_bytes():
    """Physical VMEM per TensorCore; conservative fallback if unqueryable."""
    try:
        info = pltpu.get_tpu_info()
        cap = getattr(info, "vmem_capacity_bytes", None)
        if cap:
            return int(cap)
    except Exception:
        pass
    return 64 * 1024 * 1024  # v7x per-TC VMEM (smallest of the three gens)


def _per_step_vmem_bytes(H, W, ct, in_sz, out_sz, w_sz):
    """Per-grid-step VMEM footprint estimate for channel tile `ct`."""
    io = 2 * H * W * ct * (in_sz + out_sz)        # double-buffered in/out tiles
    wb = 2 * (9 + 1) * ct * w_sz                  # weights + bias (double-buffered)
    halo = (H + 2) * (W + 2) * ct * 4             # f32 halo scratch (single)
    live = 3 * H * W * ct * 4                     # live f32 values (acc, xs, temp)
    return io + wb + halo + live


def _pick_channel_tile(Cp, B, H, W, in_sz, out_sz, w_sz, budget_bytes):
    """Largest multiple-of-128 divisor of Cp that fits the VMEM budget and
    (when possible) still leaves >= 2 grid steps for megacore / pipelining."""
    fitting = [
        ct for ct in range(LANE, Cp + 1, LANE)
        if Cp % ct == 0
        and _per_step_vmem_bytes(H, W, ct, in_sz, out_sz, w_sz) <= budget_bytes
    ]
    if not fitting:
        # TODO(synk): add spatial (H) tiling for very large H*W where even
        # Ct=128 exceeds the VMEM budget; fall back to the minimum tile.
        return LANE
    for ct in sorted(fitting, reverse=True):
        if B * (Cp // ct) >= 2:
            return ct
    return max(fitting)


def dwconv_pallas(x, weight, bias, H, W):
    """PVTv2 DWConv forward.

    Args:
      x:      (B, N, C) with N == H * W.
      weight: PyTorch depthwise Conv2d weight (C, 1, 3, 3), or (3, 3, C).
      bias:   (C,)
    Returns:
      (B, N, C), same dtype as x.
    """
    B, N, C = x.shape
    assert N == H * W, "N must equal H * W"

    if weight.shape == (C, 1, 3, 3):
        w = jnp.transpose(weight[:, 0], (1, 2, 0))        # -> (3, 3, C)
    elif weight.shape == (3, 3, C):
        w = weight
    else:
        raise ValueError(f"unexpected depthwise weight shape {weight.shape}")
    assert bias.shape == (C,)

    # Glue: (B, N, C) -> (B, H, W, C); channels land on the lane axis.
    x_nhwc = x.reshape(B, H, W, C)

    # Lane-dense channel tiles: pad C up to a multiple of 128 only if needed.
    Cp = ((C + LANE - 1) // LANE) * LANE
    if Cp != C:
        pad = Cp - C
        x_nhwc = jnp.pad(x_nhwc, ((0, 0), (0, 0), (0, 0), (0, pad)))
        w = jnp.pad(w, ((0, 0), (0, 0), (0, pad)))
        bias = jnp.pad(bias, ((0, pad),))
    bias2d = bias.reshape(1, Cp)

    in_sz = jnp.dtype(x.dtype).itemsize
    out_sz = in_sz
    w_sz = jnp.dtype(w.dtype).itemsize

    # Generation-aware tiling budget and VMEM limit.
    cap = _vmem_capacity_bytes()
    budget = int(cap * 0.70)
    Ct = _pick_channel_tile(Cp, B, H, W, in_sz, out_sz, w_sz, budget)
    need = _per_step_vmem_bytes(H, W, Ct, in_sz, out_sz, w_sz)
    vmem_limit = min(max(need + (8 << 20), 32 << 20), int(cap * 0.85))

    # Channel tile outer, batch inner: weight/bias block index is constant
    # across consecutive steps, so those tiles are not re-fetched.
    grid = (Cp // Ct, B)

    cost = pl.CostEstimate(
        flops=18 * B * H * W * Cp,
        transcendentals=0,
        bytes_accessed=(x_nhwc.size * in_sz
                        + w.size * w_sz
                        + bias.size * jnp.dtype(bias.dtype).itemsize
                        + B * H * W * Cp * out_sz))

    out = pl.pallas_call(
        _dwconv_kernel,
        out_shape=jax.ShapeDtypeStruct((B, H, W, Cp), x.dtype),
        grid_spec=pltpu.PrefetchScalarGridSpec(
            num_scalar_prefetch=0,
            grid=grid,
            in_specs=[
                pl.BlockSpec((1, H, W, Ct), lambda c, b: (b, 0, 0, c)),
                pl.BlockSpec((3, 3, Ct), lambda c, b: (0, 0, c)),
                pl.BlockSpec((1, Ct), lambda c, b: (0, c)),
            ],
            out_specs=pl.BlockSpec((1, H, W, Ct), lambda c, b: (b, 0, 0, c)),
            scratch_shapes=[
                pltpu.VMEM((H + 2, W + 2, Ct), jnp.float32),
            ],
        ),
        compiler_params=pltpu.CompilerParams(
            dimension_semantics=("parallel", "parallel"),
            vmem_limit_bytes=int(vmem_limit),
        ),
        cost_estimate=cost,
    )(x_nhwc, w, bias2d)

    if Cp != C:
        out = out[..., :C]
    return out.reshape(B, N, C)


def dwconv_reference(x, weight, bias, H, W):
    """Pure-JAX reference (lax depthwise conv) for correctness checking."""
    B, N, C = x.shape
    x_nhwc = x.reshape(B, H, W, C).astype(jnp.float32)
    if weight.shape == (C, 1, 3, 3):
        w = jnp.transpose(weight[:, 0], (1, 2, 0))
    else:
        w = weight
    w_hwio = w.astype(jnp.float32).reshape(3, 3, 1, C)
    y = jax.lax.conv_general_dilated(
        x_nhwc, w_hwio, window_strides=(1, 1), padding=((1, 1), (1, 1)),
        dimension_numbers=("NHWC", "HWIO", "NHWC"), feature_group_count=C)
    y = y + bias.astype(jnp.float32)
    return y.reshape(B, N, C).astype(x.dtype)


if __name__ == "__main__":
    key = jax.random.PRNGKey(0)

    def run_case(B, H, W, C, dtype):
        N = H * W
        kx, kw, kb = jax.random.split(jax.random.fold_in(key, H * 131 + W * 7 + C), 3)
        x = jax.random.normal(kx, (B, N, C), dtype=jnp.float32).astype(dtype)
        weight = (jax.random.normal(kw, (C, 1, 3, 3), dtype=jnp.float32) * 0.1).astype(dtype)
        bias = (jax.random.normal(kb, (C,), dtype=jnp.float32) * 0.1).astype(dtype)

        out = jax.block_until_ready(dwconv_pallas(x, weight, bias, H, W))
        ref = dwconv_reference(x, weight, bias, H, W)
        assert out.shape == (B, N, C)
        tol = 2e-2 if dtype == jnp.bfloat16 else 1e-5
        assert jnp.allclose(out.astype(jnp.float32), ref.astype(jnp.float32),
                            atol=tol, rtol=tol), \
            f"mismatch vs reference: B={B} H={H} W={W} C={C} dtype={dtype}"

    # Lane-dense path: C multiple of 128 -> no channel padding, f32.
    run_case(B=2, H=8, W=8, C=128, dtype=jnp.float32)
    # bf16 inputs (halved HBM traffic), f32 accumulation inside the kernel.
    run_case(B=2, H=8, W=8, C=128, dtype=jnp.bfloat16)
    # Small / unaligned case: C=32 padded to 128 in the wrapper, non-square HxW.
    run_case(B=1, H=7, W=5, C=32, dtype=jnp.float32)

    print("KERNEL_OK")
</pallas_src>

<mosaic_0001>
module attributes {stable_mosaic.version = 11 : i64} {
  func.func @_dwconv_kernel(%arg0: i32, %arg1: i32, %arg2: memref<1x8x8x128xf32, #tpu.memory_space<vmem>>, %arg3: memref<3x3x128xf32, #tpu.memory_space<vmem>>, %arg4: memref<1x128xf32, #tpu.memory_space<vmem>>, %arg5: memref<1x8x8x128xf32, #tpu.memory_space<vmem>>, %arg6: memref<10x10x128xf32, #tpu.memory_space<vmem>>) attributes {dimension_semantics = [#tpu.dimension_semantics<parallel>, #tpu.dimension_semantics<parallel>], iteration_bounds = array<i64: 1, 2>, scalar_prefetch = 0 : i64, scratch_operands = 1 : i64, tpu.core_type = #tpu.core_type<tc>, window_params = [{transform_indices = @transform_0, window_bounds = array<i64: 1, 8, 8, 128>}, {transform_indices = @transform_1, window_bounds = array<i64: 3, 3, 128>}, {transform_indices = @transform_2, window_bounds = array<i64: 1, 128>}, {transform_indices = @transform_3, window_bounds = array<i64: 1, 8, 8, 128>}]} {
    %cst = arith.constant 0.000000e+00 : f32
    %0 = vector.broadcast %cst : f32 to vector<10x128xf32>
    %c0 = arith.constant 0 : index
    %c0_0 = arith.constant 0 : index
    %c0_1 = arith.constant 0 : index
    %1 = vector.load %arg6[%c0, %c0_0, %c0_1] : memref<10x10x128xf32, #tpu.memory_space<vmem>>, vector<1x10x128xf32>
    %2 = vector.shape_cast %1 : vector<1x10x128xf32> to vector<10x128xf32>
    %3 = vector.shape_cast %0 : vector<10x128xf32> to vector<1x10x128xf32>
    tpu.vector_store %arg6[%c0, %c0_0, %c0_1], %3 {strides = array<i32>} : memref<10x10x128xf32, #tpu.memory_space<vmem>>, vector<1x10x128xf32>,
    %c9 = arith.constant 9 : index
    %c0_2 = arith.constant 0 : index
    %c0_3 = arith.constant 0 : index
    %4 = vector.load %arg6[%c9, %c0_2, %c0_3] : memref<10x10x128xf32, #tpu.memory_space<vmem>>, vector<1x10x128xf32>
    %5 = vector.shape_cast %4 : vector<1x10x128xf32> to vector<10x128xf32>
    %6 = vector.shape_cast %0 : vector<10x128xf32> to vector<1x10x128xf32>
    tpu.vector_store %arg6[%c9, %c0_2, %c0_3], %6 {strides = array<i32>} : memref<10x10x128xf32, #tpu.memory_space<vmem>>, vector<1x10x128xf32>,
    %cst_4 = arith.constant 0.000000e+00 : f32
    %7 = vector.broadcast %cst_4 : f32 to vector<10x1x128xf32>
    %c0_5 = arith.constant 0 : index
    %c0_6 = arith.constant 0 : index
    %c0_7 = arith.constant 0 : index
    %8 = vector.load %arg6[%c0_5, %c0_6, %c0_7] : memref<10x10x128xf32, #tpu.memory_space<vmem>>, vector<10x1x128xf32>
    tpu.vector_store %arg6[%c0_5, %c0_6, %c0_7], %7 {strides = array<i32>} : memref<10x10x128xf32, #tpu.memory_space<vmem>>, vector<10x1x128xf32>,
    %c0_8 = arith.constant 0 : index
    %c9_9 = arith.constant 9 : index
    %c0_10 = arith.constant 0 : index
    %9 = vector.load %arg6[%c0_8, %c9_9, %c0_10] : memref<10x10x128xf32, #tpu.memory_space<vmem>>, vector<10x1x128xf32>
    tpu.vector_store %arg6[%c0_8, %c9_9, %c0_10], %7 {strides = array<i32>} : memref<10x10x128xf32, #tpu.memory_space<vmem>>, vector<10x1x128xf32>,
    %c0_11 = arith.constant 0 : index
    %c0_12 = arith.constant 0 : index
    %c0_13 = arith.constant 0 : index
    %c0_14 = arith.constant 0 : index
    %10 = vector.load %arg2[%c0_11, %c0_12, %c0_13, %c0_14] : memref<1x8x8x128xf32, #tpu.memory_space<vmem>>, vector<1x8x8x128xf32>
    %11 = vector.shape_cast %10 : vector<1x8x8x128xf32> to vector<8x8x128xf32>
    %c1 = arith.constant 1 : index
    %c1_15 = arith.constant 1 : index
    %c0_16 = arith.constant 0 : index
    %12 = vector.load %arg6[%c1, %c1_15, %c0_16] : memref<10x10x128xf32, #tpu.memory_space<vmem>>, vector<8x8x128xf32>
    tpu.vector_store %arg6[%c1, %c1_15, %c0_16], %11 {strides = array<i32>} : memref<10x10x128xf32, #tpu.memory_space<vmem>>, vector<8x8x128xf32>,
    %c0_17 = arith.constant 0 : index
    %c0_18 = arith.constant 0 : index
    %c0_19 = arith.constant 0 : index
    %13 = vector.load %arg3[%c0_17, %c0_18, %c0_19] : memref<3x3x128xf32, #tpu.memory_space<vmem>>, vector<3x3x128xf32>
    %c0_20 = arith.constant 0 : index
    %c0_21 = arith.constant 0 : index
    %c0_22 = arith.constant 0 : index
    %14 = vector.load %arg6[%c0_20, %c0_21, %c0_22] : memref<10x10x128xf32, #tpu.memory_space<vmem>>, vector<10x8x128xf32>
    %15 = vector.extract_strided_slice %14 {offsets = [0, 0, 0], sizes = [8, 8, 128], strides = [1, 1, 1]} : vector<10x8x128xf32> to vector<8x8x128xf32>
    %16 = vector.extract_strided_slice %13 {offsets = [0, 0, 0], sizes = [1, 1, 128], strides = [1, 1, 1]} : vector<3x3x128xf32> to vector<1x1x128xf32>
    %17 = vector.shape_cast %16 : vector<1x1x128xf32> to vector<128xf32>
    %18 = vector.shape_cast %17 : vector<128xf32> to vector<1x1x128xf32>
    %19 = vector.broadcast %18 : vector<1x1x128xf32> to vector<8x8x128xf32>
    %20 = arith.mulf %15, %19 : vector<8x8x128xf32>
    %21 = vector.extract_strided_slice %14 {offsets = [1, 0, 0], sizes = [8, 8, 128], strides = [1, 1, 1]} : vector<10x8x128xf32> to vector<8x8x128xf32>
    %22 = vector.extract_strided_slice %13 {offsets = [1, 0, 0], sizes = [1, 1, 128], strides = [1, 1, 1]} : vector<3x3x128xf32> to vector<1x1x128xf32>
    %23 = vector.shape_cast %22 : vector<1x1x128xf32> to vector<128xf32>
    %24 = vector.shape_cast %23 : vector<128xf32> to vector<1x1x128xf32>
    %25 = vector.broadcast %24 : vector<1x1x128xf32> to vector<8x8x128xf32>
    %26 = arith.mulf %21, %25 : vector<8x8x128xf32>
    %27 = arith.addf %20, %26 : vector<8x8x128xf32>
    %28 = vector.extract_strided_slice %14 {offsets = [2, 0, 0], sizes = [8, 8, 128], strides = [1, 1, 1]} : vector<10x8x128xf32> to vector<8x8x128xf32>
    %29 = vector.extract_strided_slice %13 {offsets = [2, 0, 0], sizes = [1, 1, 128], strides = [1, 1, 1]} : vector<3x3x128xf32> to vector<1x1x128xf32>
    %30 = vector.shape_cast %29 : vector<1x1x128xf32> to vector<128xf32>
    %31 = vector.shape_cast %30 : vector<128xf32> to vector<1x1x128xf32>
    %32 = vector.broadcast %31 : vector<1x1x128xf32> to vector<8x8x128xf32>
    %33 = arith.mulf %28, %32 : vector<8x8x128xf32>
    %34 = arith.addf %27, %33 : vector<8x8x128xf32>
    %c0_23 = arith.constant 0 : index
    %c1_24 = arith.constant 1 : index
    %c0_25 = arith.constant 0 : index
    %35 = vector.load %arg6[%c0_23, %c1_24, %c0_25] : memref<10x10x128xf32, #tpu.memory_space<vmem>>, vector<10x8x128xf32>
    %36 = vector.extract_strided_slice %35 {offsets = [0, 0, 0], sizes = [8, 8, 128], strides = [1, 1, 1]} : vector<10x8x128xf32> to vector<8x8x128xf32>
    %37 = vector.extract_strided_slice %13 {offsets = [0, 1, 0], sizes = [1, 1, 128], strides = [1, 1, 1]} : vector<3x3x128xf32> to vector<1x1x128xf32>
    %38 = vector.shape_cast %37 : vector<1x1x128xf32> to vector<128xf32>
    %39 = vector.shape_cast %38 : vector<128xf32> to vector<1x1x128xf32>
    %40 = vector.broadcast %39 : vector<1x1x128xf32> to vector<8x8x128xf32>
    %41 = arith.mulf %36, %40 : vector<8x8x128xf32>
    %42 = arith.addf %34, %41 : vector<8x8x128xf32>
    %43 = vector.extract_strided_slice %35 {offsets = [1, 0, 0], sizes = [8, 8, 128], strides = [1, 1, 1]} : vector<10x8x128xf32> to vector<8x8x128xf32>
    %44 = vector.extract_strided_slice %13 {offsets = [1, 1, 0], sizes = [1, 1, 128], strides = [1, 1, 1]} : vector<3x3x128xf32> to vector<1x1x128xf32>
    %45 = vector.shape_cast %44 : vector<1x1x128xf32> to vector<128xf32>
    %46 = vector.shape_cast %45 : vector<128xf32> to vector<1x1x128xf32>
    %47 = vector.broadcast %46 : vector<1x1x128xf32> to vector<8x8x128xf32>
    %48 = arith.mulf %43, %47 : vector<8x8x128xf32>
    %49 = arith.addf %42, %48 : vector<8x8x128xf32>
    %50 = vector.extract_strided_slice %35 {offsets = [2, 0, 0], sizes = [8, 8, 128], strides = [1, 1, 1]} : vector<10x8x128xf32> to vector<8x8x128xf32>
    %51 = vector.extract_strided_slice %13 {offsets = [2, 1, 0], sizes = [1, 1, 128], strides = [1, 1, 1]} : vector<3x3x128xf32> to vector<1x1x128xf32>
    %52 = vector.shape_cast %51 : vector<1x1x128xf32> to vector<128xf32>
    %53 = vector.shape_cast %52 : vector<128xf32> to vector<1x1x128xf32>
    %54 = vector.broadcast %53 : vector<1x1x128xf32> to vector<8x8x128xf32>
    %55 = arith.mulf %50, %54 : vector<8x8x128xf32>
    %56 = arith.addf %49, %55 : vector<8x8x128xf32>
    %c0_26 = arith.constant 0 : index
    %c2 = arith.constant 2 : index
    %c0_27 = arith.constant 0 : index
    %57 = vector.load %arg6[%c0_26, %c2, %c0_27] : memref<10x10x128xf32, #tpu.memory_space<vmem>>, vector<10x8x128xf32>
    %58 = vector.extract_strided_slice %57 {offsets = [0, 0, 0], sizes = [8, 8, 128], strides = [1, 1, 1]} : vector<10x8x128xf32> to vector<8x8x128xf32>
    %59 = vector.extract_strided_slice %13 {offsets = [0, 2, 0], sizes = [1, 1, 128], strides = [1, 1, 1]} : vector<3x3x128xf32> to vector<1x1x128xf32>
    %60 = vector.shape_cast %59 : vector<1x1x128xf32> to vector<128xf32>
    %61 = vector.shape_cast %60 : vector<128xf32> to vector<1x1x128xf32>
    %62 = vector.broadcast %61 : vector<1x1x128xf32> to vector<8x8x128xf32>
    %63 = arith.mulf %58, %62 : vector<8x8x128xf32>
    %64 = arith.addf %56, %63 : vector<8x8x128xf32>
    %65 = vector.extract_strided_slice %57 {offsets = [1, 0, 0], sizes = [8, 8, 128], strides = [1, 1, 1]} : vector<10x8x128xf32> to vector<8x8x128xf32>
    %66 = vector.extract_strided_slice %13 {offsets = [1, 2, 0], sizes = [1, 1, 128], strides = [1, 1, 1]} : vector<3x3x128xf32> to vector<1x1x128xf32>
    %67 = vector.shape_cast %66 : vector<1x1x128xf32> to vector<128xf32>
    %68 = vector.shape_cast %67 : vector<128xf32> to vector<1x1x128xf32>
    %69 = vector.broadcast %68 : vector<1x1x128xf32> to vector<8x8x128xf32>
    %70 = arith.mulf %65, %69 : vector<8x8x128xf32>
    %71 = arith.addf %64, %70 : vector<8x8x128xf32>
    %72 = vector.extract_strided_slice %57 {offsets = [2, 0, 0], sizes = [8, 8, 128], strides = [1, 1, 1]} : vector<10x8x128xf32> to vector<8x8x128xf32>
    %73 = vector.extract_strided_slice %13 {offsets = [2, 2, 0], sizes = [1, 1, 128], strides = [1, 1, 1]} : vector<3x3x128xf32> to vector<1x1x128xf32>
    %74 = vector.shape_cast %73 : vector<1x1x128xf32> to vector<128xf32>
    %75 = vector.shape_cast %74 : vector<128xf32> to vector<1x1x128xf32>
    %76 = vector.broadcast %75 : vector<1x1x128xf32> to vector<8x8x128xf32>
    %77 = arith.mulf %72, %76 : vector<8x8x128xf32>
    %78 = arith.addf %71, %77 : vector<8x8x128xf32>
    %c0_28 = arith.constant 0 : index
    %c0_29 = arith.constant 0 : index
    %79 = vector.load %arg4[%c0_28, %c0_29] : memref<1x128xf32, #tpu.memory_space<vmem>>, vector<1x128xf32>
    %80 = vector.shape_cast %79 : vector<1x128xf32> to vector<128xf32>
    %81 = vector.shape_cast %80 : vector<128xf32> to vector<1x1x128xf32>
    %82 = vector.broadcast %81 : vector<1x1x128xf32> to vector<8x8x128xf32>
    %83 = arith.addf %78, %82 : vector<8x8x128xf32>
    %c0_30 = arith.constant 0 : index
    %c0_31 = arith.constant 0 : index
    %c0_32 = arith.constant 0 : index
    %c0_33 = arith.constant 0 : index
    %84 = vector.load %arg5[%c0_30, %c0_31, %c0_32, %c0_33] : memref<1x8x8x128xf32, #tpu.memory_space<vmem>>, vector<1x8x8x128xf32>
    %85 = vector.shape_cast %84 : vector<1x8x8x128xf32> to vector<8x8x128xf32>
    %86 = vector.shape_cast %83 : vector<8x8x128xf32> to vector<1x8x8x128xf32>
    tpu.vector_store %arg5[%c0_30, %c0_31, %c0_32, %c0_33], %86 {strides = array<i32>} : memref<1x8x8x128xf32, #tpu.memory_space<vmem>>, vector<1x8x8x128xf32>,
    return
  }
  func.func @transform_0(%arg0: i32, %arg1: i32) -> (i32, i32, i32, i32) {
    %c0_i32 = arith.constant 0 : i32
    %c0_i32_0 = arith.constant 0 : i32
    %c0_i32_1 = arith.constant 0 : i32
    return %arg1, %c0_i32, %c0_i32_0, %arg0 : i32, i32, i32, i32
  }
  func.func @transform_1(%arg0: i32, %arg1: i32) -> (i32, i32, i32) {
    %c0_i32 = arith.constant 0 : i32
    %c0_i32_0 = arith.constant 0 : i32
    %c0_i32_1 = arith.constant 0 : i32
    return %c0_i32, %c0_i32_0, %arg0 : i32, i32, i32
  }
  func.func @transform_2(%arg0: i32, %arg1: i32) -> (i32, i32) {
    %c0_i32 = arith.constant 0 : i32
    %c0_i32_0 = arith.constant 0 : i32
    return %c0_i32, %arg0 : i32, i32
  }
  func.func @transform_3(%arg0: i32, %arg1: i32) -> (i32, i32, i32, i32) {
    %c0_i32 = arith.constant 0 : i32
    %c0_i32_0 = arith.constant 0 : i32
    %c0_i32_1 = arith.constant 0 : i32
    return %arg1, %c0_i32, %c0_i32_0, %arg0 : i32, i32, i32, i32
  }
}

</mosaic_0001>

<bundles_post_ra>
// kernel: tpu_custom_call.1
= control target key start
LH: loop header
LB: loop body
LE: loop exit
PB: predicated region body
PF: predicated region fallthrough
CT: control target
= control target key end

     0   :  { %s1237_s0 = inlined_call_operand.hbm [shape: f32[2,8,8,128], index: 0, kind: input, shape index: {}]   ;;  %s1238_s1 = inlined_call_operand.hbm [shape: f32[3,3,128], index: 1, kind: input, shape index: {}]   ;;  %s1239_s2 = inlined_call_operand.vmem [shape: f32[1,128], index: 2, kind: input, shape index: {}]   ;;  %s1240_s3 = inlined_call_operand.hbm [shape: f32[2,8,8,128], index: 3, kind: output, shape index: {}]  }
   0x1   :  { %1241 = sst [smem:[#allocation12_spill]] %s1238_s1 }
   0x2   :  { %8 = vsyncpa [#allocation4], 0 }
   0x3   :  { %10 = vsyncpa [#allocation4 + $0x1], 0 }
   0x4   :  { %11 = vsyncpa [#allocation7], 0 }
   0x5   :  { %12 = vsyncpa [#allocation5], 0 }
   0x6   :  { %14 = vsyncpa [#allocation5 + $0x1], 0  ;;  %s889_s12 = smov 0   ;;  %s891_s13 = smov 0  }
   0x7   :  { %s893_s14 = smov 0   ;;  %s895_s15 = smov 0  }
   0x8   :  { %s897_s16 = smov 0   ;;  %s899_s17 = smov 0  }
   0x9 LB: > { %s612_s18 = sadd.s32 4294967295, %s859_s17   ;;  %s613_s19 = sadd.s32 4294967294, %s859_s17   ;;  %s859_s17 = sphi %s899_s17, %s20_s17   ;;  %s855_s16 = sphi %s897_s16, %s1254_s16   ;;  %s851_s15 = sphi %s895_s15, %s1253_s15   ;;  %s847_s14 = sphi %s893_s14, %s1252_s14   ;;  %s843_s13 = sphi %s891_s13, %s1251_s13   ;;  %s839_s12 = sphi %s889_s12, %s1250_s12  }
   0xa   : > { %p54_p0 = scmp.ne.s32.totalorder %s843_s13, %s839_s12  ;;  %p923_p1 = scmp.eq.s32.totalorder %s612_s18, 0 }
   0xb   : > { %p927_p2 = scmp.eq.s32.totalorder %s612_s18, 1  ;;  %p138_p3 = scmp.eq.s32.totalorder %s613_s19, 1 }
   0xc   : > { %p933_p4 = por %p923_p1, %p54_p0  ;;  %p614_p5 = scmp.ge.s32.totalorder %s859_s17, 1 }
   0xd   : > { %p938_p6 = por %p138_p3, %p54_p0  ;;  %p145_p7 = scmp.lt.s32.totalorder %s859_s17, 3 }
   0xe   : > { %s1246_s1 = sld [smem:[#allocation12_spill]]  ;;  %s861_s28 = smov [#allocation6]  }
   0xf   : > { %p946_p8 = pnand %p614_p5, %p145_p7  ;;  %s160_s29 = sshll.u32 %s861_s28, 4  ;;  %s161_s29 = int_to_ptr.vmem [resolvable:$true] %s160_s29 }
  0x10   : > { %p617_p11 = scmp.ge.s32.totalorder %s859_s17, 2  ;;  %s862_s30 = smov 64  }
  0x11   : > { %p640_p9 = pneg %p946_p8  ;;  %s863_s4 = smov 4  }
  0x12   : > { %s29_s5 = sadd.s32 1, %s855_s16  ;;  %s41_s6 = sadd.s32 1, %s847_s14 }
  0x13   : > { %p641_p10 = pnand %p640_p9, %p923_p1  ;;  %p30_p12 = scmp.ge.s32.totalorder %s29_s5, 2 }
  0x14   : > { %s158_s26 = sshll.u32 %s1246_s1, 4  ;;  %p48_p13 = scmp.ne.s32.totalorder %s847_s14, %s843_s13  ;;  %s159_s26 = int_to_ptr.hbm [resolvable:$true] %s158_s26 }
  0x15   : > { %643 = dma.hbm_to_vmem [thread:$0]  (!%p641_p10), %s159_s26, 192, %s161_s29, [#allocation7], %s862_s30, %s862_s30, %s863_s4  }
  0x16   : > { %p49_p0 = scmp.eq.s32.totalorder %s859_s17, 0  ;;  %s1256_s5 = smov (%p30_p12, %s29_s5), 0 }
  0x17   : > { %p968_p5 = por %p927_p2, %p48_p13  ;;  %s36_s9 = ssub.s32 %s855_s16, %s1256_s5 }
  0x18   : > { %p962_p3 = por %p49_p0, %p48_p13  ;;  %p653_p7 = scmp.lt.s32.totalorder %s859_s17, 2 }
  0x19   : > { %p39_p9 = scmp.eq.s32.totalorder %s36_s9, 0  ;;  %s180_s10 = sand.u32 1, %s847_s14  }
  0x1a   : > { %s618_s11 = sshll.u32 %s180_s10, 6  ;;  %s630_s19 = sshll.u32 %s855_s16, 6 }
  0x1b   : > { %s977_s18 = scalar_select %p39_p9, %s847_s14, %s41_s6  }
  0x1c   : > { %s190_s26 = scalar_lea.hbm %s1237_s0, %s630_s19  ;;  %s184_s28 = scalar_lea.vmem [#allocation3], %s618_s11 }
  0x1d   : > { %s193_s29 = sshll.u32 %s184_s28, 4  ;;  %s191_s21 = sshll.u32 %s190_s26, 4  ;;  %s194_s29 = int_to_ptr.vmem [resolvable:$true] %s193_s29  ;;  %s192_s21 = int_to_ptr.hbm [resolvable:$true] %s191_s21 }
  0x1e   : > { %p645_p2 = pnand %p653_p7, %p962_p3  ;;  %s181_s30 = scalar_lea.sflag [#allocation4], %s180_s10 }
  0x1f   : > { %s864_s4 = smov 128   ;;  %s865_s1 = smov 8  }
  0x20   : > { %647 = dma.hbm_to_vmem [thread:$0]  (!%p645_p2), %s192_s21, 1024, %s194_s29, %s181_s30, %s864_s4, %s864_s4, %s865_s1  }
  0x21   : > { %205 = sbr.rel (%p946_p8) target bundleno = 119 (0x77), region = 32  ;;  %s988_s6 = sand.u32 (!%p946_p8), 1, %s843_s13  }
  0x22   : > { %s622_s9 = sshll.u32 (!%p946_p8), %s988_s6, 6  ;;  %s208_s11 = scalar_lea.sflag (!%p946_p8), [#allocation4], %s988_s6 }
  0x23   : > { %s994_s19 = scalar_lea.vmem (!%p946_p8), [#allocation3], %s622_s9 }
  0x26   : > { %826 = dma.done.wait (%p933_p4), %s208_s11, 1024  }
  0x27   : > { %828 = vsyncadd (%p933_p4), %s208_s11, 4294966272 }
  0x28   : > { %830 = dma.done.wait (%p923_p1), [#allocation7], 192  }
  0x29   : > { %832 = vsyncadd (%p923_p1), [#allocation7], 4294967104  ;;  %v866_v0 = vmov 0.0   ;;  %v288_v1 = vld [vmem:[#allocation6] sm:$0x7]  ;;  %v272_v4 = vld [vmem:[%s994_s19 + $0x8] sm:$0xff] }
  0x2a   : > { %246 = vst [vmem:[#allocation2] sm:$0xff] %v866_v0  ;;  %v271_v2 = vld [vmem:[%s994_s19] sm:$0xff]  ;;  %v290_v5 = vld [vmem:[#allocation6 + $0x8] sm:$0x7]  ;;  %v1006_v6 = vperm.slane %v288_v1, 0  ;;  %v273_v7 = vld [vmem:[%s994_s19 + $0x10] sm:$0xff] }
  0x2b   : > { %247 = vst [vmem:[#allocation2 + $0x8] sm:$0x3] %v866_v0  ;;  %v289_v3 = vld [vmem:[#allocation6 + $0x4] sm:$0x7]  ;;  %v1009_v9 = vperm.slane %v288_v1, 1  ;;  %v274_v11 = vld [vmem:[%s994_s19 + $0x18] sm:$0xff] }
  0x2c   : > { %249 = vst [vmem:[#allocation2 + $0x90] sm:$0xff] %v866_v0  ;;  %v1011_v10 = vperm.slane %v289_v3, 1  ;;  %v275_v13 = vld [vmem:[%s994_s19 + $0x20] sm:$0xff]  ;;  %v1015_v14 = vperm.slane %v289_v3, 0  ;;  %v276_v15 = vld [vmem:[%s994_s19 + $0x28] sm:$0xff]  ;;  %v1019_v17 = vperm.slane %v290_v5, 0 }
  0x2d   : > { %250 = vst [vmem:[#allocation2 + $0x98] sm:$0x3] %v866_v0  ;;  %v1021_v18 = vperm.slane %v290_v5, 1  ;;  %v1023_v19 = vperm.slane %v288_v1, 2  ;;  %v1026_v20 = vld [vmem:[%s994_s19 + $0x30] sm:$0xff]  ;;  %v1032_v23 = vperm.slane %v289_v3, 2  ;;  %v356_v27 = vmul.f32 %v1009_v9, %v271_v2 }
  0x2e   : > { %251 = vst [vmem:[#allocation2] sm:$0x1] %v866_v0  ;;  %v1030_v22 = vmul.f32 %v1011_v10, %v271_v2  ;;  %v1034_v24 = vperm.slane %v290_v5, 2  ;;  %v1037_v25 = vld [vmem:[%s994_s19 + $0x38] sm:$0xff]  ;;  %v1044_v28 = vmul.f32 %v1011_v10, %v272_v4  ;;  %v1047_v29 = vmul.f32 %v1009_v9, %v272_v4  ;;  %s1159_s22 = scalar_lea.vmem [#allocation8], %s622_s9  ;;  %s631_s27 = sshll.u32 %s851_s15, 6 }
  0x2f   : > { %252 = vst [vmem:[#allocation2 + $0x10] sm:$0x1] %v866_v0  ;;  %v1040_v26 = vmul.f32 %v1021_v18, %v272_v4  ;;  %v1050_v30 = vmul.f32 %v1021_v18, %v273_v7  ;;  %v1053_v31 = vmul.f32 %v1011_v10, %v273_v7  ;;  %v1056_v32 = vmul.f32 %v1021_v18, %v274_v11  ;;  %s499_s24 = scalar_lea.hbm %s1240_s3, %s631_s27  ;;  %s500_s25 = sshll.u32 %s1159_s22, 4  ;;  %s501_s25 = int_to_ptr.vmem [resolvable:$true] %s500_s25 }
  0x30   : > { %253 = vst [vmem:[#allocation2 + $0x20] sm:$0x1] %v866_v0  ;;  %v1059_v33 = vmul.f32 %v1009_v9, %v273_v7  ;;  %v1063_v35 = vmul.f32 %v1011_v10, %v274_v11  ;;  %v1066_v36 = vmul.f32 %v1021_v18, %v275_v13  ;;  %v1069_v37 = vmul.f32 %v1009_v9, %v274_v11  ;;  %s502_s15 = sshll.u32 %s499_s24, 4  ;;  %s487_s26 = scalar_lea.sflag [#allocation5], %s988_s6  ;;  %s503_s15 = int_to_ptr.hbm [resolvable:$true] %s502_s15 }
  0x31   : > { %254 = vst [vmem:[#allocation2 + $0x30] sm:$0x1] %v866_v0  ;;  %v1072_v38 = vmul.f32 %v1011_v10, %v275_v13  ;;  %v1076_v42 = vmul.f32 %v1021_v18, %v276_v15  ;;  %v1079_v43 = vmul.f32 %v1009_v9, %v275_v13  ;;  %v1082_v44 = vmul.f32 %v1011_v10, %v276_v15  ;;  %s787_s28 = sshra.s32 %s503_s15, 4  ;;  %s793_s4 = scalar_lea.hbm %s1240_s3, 128  ;;  %s788_s28 = int_to_ptr.hbm [resolvable:$true] %s787_s28 }
  0x32   : > { %255 = vst [vmem:[#allocation2 + $0x40] sm:$0x1] %v866_v0  ;;  %v344_v12 = vld [vmem:[#allocation2 + $0x1] sm:$0xff]  ;;  %v1086_v45 = vmul.f32 %v1021_v18, %v1026_v20  ;;  %v1091_v49 = vmul.f32 %v1009_v9, %v276_v15  ;;  %v1095_v50 = vmul.f32 %v1011_v10, %v1026_v20  ;;  %v1101_v55 = vmul.f32 %v1021_v18, %v1037_v25  ;;  %s789_s29 = scalar_lea.hbm %s788_s28, 64  ;;  %p794_p10 = scmp.lt.s32.totalorder %s788_s28, %s1240_s3 }
  0x33   : > { %256 = vst [vmem:[#allocation2 + $0x50] sm:$0x1] %v866_v0  ;;  %v355_v21 = vmul.f32 %v1009_v9, %v344_v12  ;;  %p790_p1 = scmp.ne.s32.totalorder %s788_s28, %s789_s29  ;;  %p795_p12 = scmp.lt.s32.totalorder %s793_s4, %s789_s29 }
  0x34   : > { %257 = vst [vmem:[#allocation2 + $0x60] sm:$0x1] %v866_v0 }
  0x35   : > { %258 = vst [vmem:[#allocation2 + $0x70] sm:$0x1] %v866_v0  ;;  %v291_v8 = vld [vmem:[#allocation2] sm:$0xff]  ;;  %p791_p4 = pnand %p790_p1, %p968_p5  ;;  %p796_p13 = por %p795_p12, %p794_p10 }
  0x36   : > { %259 = vst [vmem:[#allocation2 + $0x80] sm:$0x1] %v866_v0  ;;  %v302_v16 = vmul.f32 %v1006_v6, %v291_v8 }
  0x37   : > { %262 = vst [vmem:[#allocation2 + $0x19] sm:$0x1] %v866_v0  ;;  %p792_p8 = pneg %p791_p4 }
  0x38   : > { %263 = vst [vmem:[#allocation2 + $0x29] sm:$0x1] %v866_v0 }
  0x39   : > { %264 = vst [vmem:[#allocation2 + $0x39] sm:$0x1] %v866_v0  ;;  %p797_p0 = pnand %p796_p13, %p792_p8 }
  0x3a   : > { %265 = vst [vmem:[#allocation2 + $0x49] sm:$0x1] %v866_v0 }
  0x3b   : > { %266 = vst [vmem:[#allocation2 + $0x59] sm:$0x1] %v866_v0 }
  0x3c   : > { %267 = vst [vmem:[#allocation2 + $0x69] sm:$0x1] %v866_v0 }
  0x3d   : > { %268 = vst [vmem:[#allocation2 + $0x79] sm:$0x1] %v866_v0 }
  0x3e   : > { %269 = vst [vmem:[#allocation2 + $0x89] sm:$0x1] %v866_v0 }
  0x3f   : > { %260 = vst [vmem:[#allocation2 + $0x90] sm:$0x1] %v866_v0 }
  0x40   : > { %261 = vst [vmem:[#allocation2 + $0x9] sm:$0x1] %v866_v0 }
  0x41   : > { %270 = vst [vmem:[#allocation2 + $0x99] sm:$0x1] %v866_v0 }
  0x42   : > { %280 = vst [vmem:[#allocation2 + $0x11] sm:$0xff] %v271_v2 }
  0x43   : > { %281 = vst [vmem:[#allocation2 + $0x21] sm:$0xff] %v272_v4 }
  0x44   : > { %282 = vst [vmem:[#allocation2 + $0x31] sm:$0xff] %v273_v7 }
  0x45   : > { %283 = vst [vmem:[#allocation2 + $0x41] sm:$0xff] %v274_v11 }
  0x46   : > { %284 = vst [vmem:[#allocation2 + $0x51] sm:$0xff] %v275_v13  ;;  %v300_v39 = vld [vmem:[#allocation2 + $0x90] sm:$0xff] }
  0x47   : > { %285 = vst [vmem:[#allocation2 + $0x61] sm:$0xff] %v276_v15  ;;  %v405_v34 = vld [vmem:[#allocation2 + $0x2] sm:$0xff]  ;;  %v1104_v56 = vmul.f32 %v1019_v17, %v300_v39 }
  0x48   : > { %286 = vst [vmem:[#allocation2 + $0x71] sm:$0xff] %v1026_v20  ;;  %v416_v52 = vmul.f32 %v1023_v19, %v405_v34 }
  0x49   : > { %287 = vst [vmem:[#allocation2 + $0x81] sm:$0xff] %v1037_v25  ;;  %v292_v40 = vld [vmem:[#allocation2 + $0x10] sm:$0xff] }
  0x4a   : > { %v406_v41 = vld [vmem:[#allocation2 + $0x12] sm:$0xff]  ;;  %v293_v46 = vld [vmem:[#allocation2 + $0x20] sm:$0xff]  ;;  %v311_v47 = vmul.f32 %v1015_v14, %v292_v40  ;;  %v303_v48 = vmul.f32 %v1006_v6, %v292_v40 }
  0x4b   : > { %v407_v51 = vld [vmem:[#allocation2 + $0x22] sm:$0xff]  ;;  %v294_v53 = vld [vmem:[#allocation2 + $0x30] sm:$0xff]  ;;  %v312_v54 = vmul.f32 %v1015_v14, %v293_v46  ;;  %v328_v58 = vmul.f32 %v1019_v17, %v293_v46  ;;  %v433_v59 = vmul.f32 %v1032_v23, %v406_v41  ;;  %v304_v61 = vmul.f32 %v1006_v6, %v293_v46 }
  0x4c   : > { %v319_v57 = vadd.f32 %v311_v47, %v302_v16  ;;  %v295_v60 = vld [vmem:[#allocation2 + $0x40] sm:$0xff]  ;;  %v329_v63 = vmul.f32 %v1019_v17, %v294_v53  ;;  %v408_v0 = vld [vmem:[#allocation2 + $0x32] sm:$0xff]  ;;  %v417_v1 = vmul.f32 %v1023_v19, %v406_v41  ;;  %v313_v2 = vmul.f32 %v1015_v14, %v294_v53 }
  0x4d   : > { %v320_v62 = vadd.f32 %v312_v54, %v303_v48  ;;  %v296_v3 = vld [vmem:[#allocation2 + $0x50] sm:$0xff]  ;;  %v450_v5 = vmul.f32 %v1034_v24, %v407_v51  ;;  %v434_v7 = vmul.f32 %v1032_v23, %v407_v51  ;;  %v305_v8 = vmul.f32 %v1006_v6, %v294_v53  ;;  %v409_v15 = vld [vmem:[#allocation2 + $0x42] sm:$0xff] }
  0x4e   : > { %v336_v4 = vadd.f32 %v328_v58, %v319_v57  ;;  %v321_v12 = vadd.f32 %v313_v2, %v304_v61  ;;  %v330_v13 = vmul.f32 %v1019_v17, %v295_v60  ;;  %v314_v16 = vmul.f32 %v1015_v14, %v295_v60  ;;  %v297_v54 = vld [vmem:[#allocation2 + $0x60] sm:$0xff] }
  0x4f   : > { %v337_v11 = vadd.f32 %v329_v63, %v320_v62  ;;  %v451_v39 = vmul.f32 %v1034_v24, %v408_v0  ;;  %v418_v40 = vmul.f32 %v1023_v19, %v407_v51  ;;  %v331_v41 = vmul.f32 %v1019_v17, %v296_v3  ;;  %v298_v2 = vld [vmem:[#allocation2 + $0x70] sm:$0xff] }
  0x50   : > { %v363_v34 = vadd.f32 %v355_v21, %v336_v4  ;;  %v338_v47 = vadd.f32 %v330_v13, %v321_v12  ;;  %v322_v48 = vadd.f32 %v314_v16, %v305_v8  ;;  %v306_v53 = vmul.f32 %v1006_v6, %v295_v60 }
  0x51   : > { %v364_v46 = vadd.f32 %v356_v27, %v337_v11  ;;  %v435_v58 = vmul.f32 %v1032_v23, %v408_v0  ;;  %v452_v61 = vmul.f32 %v1034_v24, %v409_v15  ;;  %v315_v21 = vmul.f32 %v1015_v14, %v296_v3 }
  0x52   : > { %v380_v57 = vadd.f32 %v1030_v22, %v363_v34  ;;  %v365_v51 = vadd.f32 %v1047_v29, %v338_v47  ;;  %v339_v63 = vadd.f32 %v331_v41, %v322_v48  ;;  %v419_v27 = vmul.f32 %v1023_v19, %v408_v0 }
  0x53   : > { %v381_v62 = vadd.f32 %v1044_v28, %v364_v46  ;;  %v323_v8 = vadd.f32 %v315_v21, %v306_v53  ;;  %v332_v60 = vmul.f32 %v1019_v17, %v297_v54  ;;  %v307_v22 = vmul.f32 %v1006_v6, %v296_v3  ;;  %v410_v28 = vld [vmem:[#allocation2 + $0x52] sm:$0xff]  ;;  %v299_v21 = vld [vmem:[#allocation2 + $0x80] sm:$0xff] }
  0x54   : > { %v397_v4 = vadd.f32 %v1040_v26, %v380_v57  ;;  %v382_v12 = vadd.f32 %v1053_v31, %v365_v51  ;;  %v366_v13 = vadd.f32 %v1059_v33, %v339_v63  ;;  %v316_v29 = vmul.f32 %v1015_v14, %v297_v54  ;;  %v1142_v31 = vld [vmem:[%s1239_s2] ss:$0 sm:$0xff] }
  0x55   : > { %v398_v11 = vadd.f32 %v1050_v30, %v381_v62  ;;  %v436_v0 = vmul.f32 %v1032_v23, %v409_v15  ;;  %v340_v34 = vadd.f32 %v332_v60, %v323_v8  ;;  %v333_v26 = vmul.f32 %v1019_v17, %v298_v2 }
  0x56   : > { %v424_v16 = vadd.f32 %v416_v52, %v397_v4  ;;  %v399_v46 = vadd.f32 %v1056_v32, %v382_v12  ;;  %v383_v3 = vadd.f32 %v1063_v35, %v366_v13  ;;  %v324_v47 = vadd.f32 %v316_v29, %v307_v22  ;;  %v412_v12 = vld [vmem:[#allocation2 + $0x72] sm:$0xff] }
  0x57   : > { %v425_v41 = vadd.f32 %v417_v1, %v398_v11  ;;  %v453_v33 = vmul.f32 %v1034_v24, %v410_v28  ;;  %v367_v52 = vadd.f32 %v1069_v37, %v340_v34  ;;  %v420_v48 = vmul.f32 %v1023_v19, %v409_v15  ;;  %v411_v37 = vld [vmem:[#allocation2 + $0x62] sm:$0xff] }
  0x58   : > { %v441_v30 = vadd.f32 %v433_v59, %v424_v16  ;;  %v426_v57 = vadd.f32 %v418_v40, %v399_v46  ;;  %v400_v1 = vadd.f32 %v1066_v36, %v383_v3  ;;  %v341_v32 = vadd.f32 %v333_v26, %v324_v47 }
  0x59   : > { %v442_v53 = vadd.f32 %v434_v7, %v425_v41  ;;  %v384_v59 = vadd.f32 %v1072_v38, %v367_v52  ;;  %v308_v62 = vmul.f32 %v1006_v6, %v297_v54  ;;  %v317_v51 = vmul.f32 %v1015_v14, %v298_v2 }
  0x5a   : > { %v458_v35 = vadd.f32 %v450_v5, %v441_v30  ;;  %v443_v4 = vadd.f32 %v435_v58, %v426_v57  ;;  %v427_v8 = vadd.f32 %v419_v27, %v400_v1  ;;  %v368_v15 = vadd.f32 %v1079_v43, %v341_v32 }
  0x5b   : > { %v459_v63 = vadd.f32 %v451_v39, %v442_v53  ;;  %v401_v36 = vadd.f32 %v1076_v42, %v384_v59  ;;  %v325_v40 = vadd.f32 %v317_v51, %v308_v62  ;;  %v334_v5 = vmul.f32 %v1019_v17, %v299_v21 }
  0x5c   : > { %v470_v7 = vadd.f32 %v1142_v31, %v458_v35  ;;  %v460_v60 = vadd.f32 %v452_v61, %v443_v4  ;;  %v444_v22 = vadd.f32 %v436_v0, %v427_v8  ;;  %v385_v54 = vadd.f32 %v1082_v44, %v368_v15 }
  0x5d   : > { %v471_v38 = vadd.f32 %v1142_v31, %v459_v63  ;;  %v428_v43 = vadd.f32 %v420_v48, %v401_v36  ;;  %v437_v39 = vmul.f32 %v1032_v23, %v410_v28  ;;  %v454_v42 = vmul.f32 %v1034_v24, %v411_v37 }
  0x5e   : > { %478 = vst [vmem:[%s1159_s22] sm:$0xff] %v470_v7  ;;  %v342_v58 = vadd.f32 %v334_v5, %v325_v40  ;;  %v472_v17 = vadd.f32 %v1142_v31, %v460_v60  ;;  %v461_v61 = vadd.f32 %v453_v33, %v444_v22  ;;  %v402_v44 = vadd.f32 %v1086_v45, %v385_v54  ;;  %v413_v33 = vld [vmem:[#allocation2 + $0x82] sm:$0xff] }
  0x5f   : > { %479 = vst [vmem:[%s1159_s22 + $0x8] sm:$0xff] %v471_v38  ;;  %v421_v27 = vmul.f32 %v1023_v19, %v410_v28  ;;  %v445_v11 = vadd.f32 %v437_v39, %v428_v43  ;;  %v309_v29 = vmul.f32 %v1006_v6, %v298_v2  ;;  %v318_v16 = vmul.f32 %v1015_v14, %v299_v21  ;;  %v414_v21 = vld [vmem:[#allocation2 + $0x92] sm:$0xff] }
  0x60   : > { %v369_v13 = vadd.f32 %v1091_v49, %v342_v58  ;;  %480 = vst [vmem:[%s1159_s22 + $0x10] sm:$0xff] %v472_v17  ;;  %v473_v0 = vadd.f32 %v1142_v31, %v461_v61  ;;  %v438_v26 = vmul.f32 %v1032_v23, %v411_v37  ;;  %v362_v28 = vmul.f32 %v1009_v9, %v1026_v20  ;;  %v353_v9 = vld [vmem:[#allocation2 + $0x91] sm:$0xff] }
  0x61   : > { %v429_v34 = vadd.f32 %v421_v27, %v402_v44  ;;  %v462_v41 = vadd.f32 %v454_v42, %v445_v11  ;;  %v326_v46 = vadd.f32 %v318_v16, %v309_v29  ;;  %v455_v6 = vmul.f32 %v1034_v24, %v412_v12 }
  0x62   : > { %v386_v45 = vadd.f32 %v1095_v50, %v369_v13  ;;  %481 = vst [vmem:[%s1159_s22 + $0x18] sm:$0xff] %v473_v0  ;;  %v379_v14 = vmul.f32 %v1011_v10, %v1037_v25  ;;  %v422_v47 = vmul.f32 %v1023_v19, %v411_v37  ;;  %v439_v52 = vmul.f32 %v1032_v23, %v412_v12 }
  0x63   : > { %v446_v49 = vadd.f32 %v438_v26, %v429_v34  ;;  %v474_v2 = vadd.f32 %v1142_v31, %v462_v41  ;;  %v343_v50 = vadd.f32 %v1104_v56, %v326_v46  ;;  %v396_v57 = vmul.f32 %v1021_v18, %v353_v9 }
  0x64   : > { %v403_v3 = vadd.f32 %v1101_v55, %v386_v45  ;;  %v456_v55 = vmul.f32 %v1034_v24, %v413_v33  ;;  %v423_v32 = vmul.f32 %v1023_v19, %v412_v12  ;;  %v440_v62 = vmul.f32 %v1032_v23, %v413_v33 }
  0x65   : > { %v463_v30 = vadd.f32 %v455_v6, %v446_v49  ;;  %482 = vst [vmem:[%s1159_s22 + $0x20] sm:$0xff] %v474_v2  ;;  %v370_v48 = vadd.f32 %v362_v28, %v343_v50  ;;  %v457_v51 = vmul.f32 %v1034_v24, %v414_v21 }
  0x66   : > { %v430_v20 = vadd.f32 %v422_v47, %v403_v3 }
  0x67   : > { %v475_v10 = vadd.f32 %v1142_v31, %v463_v30  ;;  %v387_v53 = vadd.f32 %v379_v14, %v370_v48 }
  0x68   : > { %v447_v25 = vadd.f32 %v439_v52, %v430_v20 }
  0x69   : > { %483 = vst [vmem:[%s1159_s22 + $0x28] sm:$0xff] %v475_v10  ;;  %v404_v1 = vadd.f32 %v396_v57, %v387_v53 }
  0x6a   : > { %v464_v56 = vadd.f32 %v456_v55, %v447_v25 }
  0x6b   : > { %v431_v59 = vadd.f32 %v423_v32, %v404_v1 }
  0x6c   : > { %v476_v35 = vadd.f32 %v1142_v31, %v464_v56 }
  0x6d   : > { %v448_v18 = vadd.f32 %v440_v62, %v431_v59 }
  0x6e   : > { %484 = vst [vmem:[%s1159_s22 + $0x30] sm:$0xff] %v476_v35 }
  0x6f   : > { %v465_v63 = vadd.f32 %v457_v51, %v448_v18 }
  0x71   : > { %v477_v19 = vadd.f32 %v1142_v31, %v465_v63 }
  0x73   : > { %485 = vst [vmem:[%s1159_s22 + $0x38] sm:$0xff] %v477_v19 }
  0x74   : > { %800 = shalt.err (!%p797_p0)
}
  0x75   : > { %s867_s6 = smov 128   ;;  %s868_s19 = smov 8  }
  0x76   : > { %638 = dma.vmem_to_hbm [thread:$0]  (%p968_p5), %s501_s25, 1024, %s503_s15, %s487_s26, %s867_s6, %s867_s6, %s868_s19  }
  0x77 PF: > { %s517_s1 = sand.u32 1, %s839_s12   ;;  %p649_p3 = pnand %p617_p11, %p938_p6 }
  0x78   : > { %s518_s20 = scalar_lea.sflag [#allocation5], %s517_s1 }
  0x79   : > { %p650_p7 = pneg %p649_p3 }
  0x7b   : > { %834 = dma.done.wait (%p650_p7), %s518_s20, 1024  }
  0x7c   : > { %836 = vsyncadd (%p650_p7), %s518_s20, 4294966272  ;;  %s20_s17 = sadd.s32 1, %s859_s17   ;;  %s1250_s12 = smov %s843_s13 }
  0x7d   : > { %p17_p9 = scmp.ge.s32.totalorder %s20_s17, 4   ;;  %s1251_s13 = smov %s847_s14 }
  0x7e   : > { %s1252_s14 = smov %s977_s18  ;;  %s1253_s15 = smov %s855_s16 }
  0x7f   : > { %s1254_s16 = smov %s1256_s5  ;;  %19 = sbr.rel (!%p17_p9) target bundleno = 9 (0x9), region = 87 }
  0x84   :  { %524 = vsyncpa [#allocation4], 1 }
  0x85   :  { %526 = vsyncpa [#allocation4 + $0x1], 1 }
  0x86   :  { %527 = vsyncpa [#allocation7], 1 }
  0x87   :  { %528 = vsyncpa [#allocation5], 1 }
  0x88   :  { %530 = vsyncpa [#allocation5 + $0x1], 1 }

</bundles_post_ra>
